<compile_context>
chip_gen: v6e
topology: v6e:2x2x1
jax: 0.10.0
libtpu: 0.0.40
codegen_flags: <defaults>
</compile_context>

<pallas_src>
import jax
import jax.numpy as jnp
from jax.experimental import pallas as pl
from jax.experimental.pallas import tpu as pltpu

HIDDEN = 128


def _autoencoder_kernel(x_ref,
                        w1_ref, b1_ref,   # Linear(input_dim -> 128), stored (in, out)
                        w2_ref, b2_ref,   # Linear(128 -> latent_dim)
                        w3_ref, b3_ref,   # Linear(latent_dim -> 128)
                        w4_ref, b4_ref,   # Linear(128 -> input_dim)
                        enc_ref, dec_ref):
    x = x_ref[...]

    # ---- encoder ----
    h1 = jnp.dot(x, w1_ref[...], preferred_element_type=jnp.float32) + b1_ref[...]
    h1 = jnp.maximum(h1, 0.0)                                   # ReLU (VPU)
    enc = jnp.dot(h1, w2_ref[...], preferred_element_type=jnp.float32) + b2_ref[...]
    enc_ref[...] = enc.astype(enc_ref.dtype)

    # ---- decoder ----
    h2 = jnp.dot(enc, w3_ref[...], preferred_element_type=jnp.float32) + b3_ref[...]
    h2 = jnp.maximum(h2, 0.0)                                   # ReLU (VPU)
    dec = jnp.dot(h2, w4_ref[...], preferred_element_type=jnp.float32) + b4_ref[...]
    dec_ref[...] = dec.astype(dec_ref.dtype)


def _round_up(n, m):
    return -(-n // m) * m


def _footprint_bytes(tile, input_dim, latent_dim):
    """Double-buffered activation tiles + intermediates for one tile size."""
    act_bytes = 2 * tile * (2 * input_dim + latent_dim) * 4      # x, dec, enc (2 bufs each)
    scratch_bytes = 2 * tile * HIDDEN * 4                        # h1, h2 intermediates
    return act_bytes + scratch_bytes


def _weight_bytes(input_dim, latent_dim):
    return 4 * (2 * input_dim * HIDDEN + 2 * HIDDEN * latent_dim
                + 2 * HIDDEN + latent_dim + input_dim)


def _choose_tile_b(batch, input_dim, latent_dim):
    """Biggest batch tile that fits a conservative VMEM budget (v7x has only
    64 MiB physical VMEM per TensorCore; leave headroom for compiler scratch).
    1024-row tiles amortize per-grid-step overhead and fill the MXU."""
    tile = min(1024, _round_up(batch, 8))
    budget = 48 * 1024 * 1024
    wb = _weight_bytes(input_dim, latent_dim)
    while tile > 8 and wb + _footprint_bytes(tile, input_dim, latent_dim) > budget:
        tile //= 2
    return max(_round_up(tile, 8), 8)


def prepare_params(params):
    """One-time glue: transpose PyTorch-style (out, in) weights to (in, out)
    and reshape biases to 2-D rows, so the per-call path does zero layout work."""
    return {
        "w1": jnp.asarray(params["w1"]).T,          # (input_dim, 128)
        "w2": jnp.asarray(params["w2"]).T,          # (128, latent_dim)
        "w3": jnp.asarray(params["w3"]).T,          # (latent_dim, 128)
        "w4": jnp.asarray(params["w4"]).T,          # (128, input_dim)
        "b1": jnp.asarray(params["b1"])[None, :],   # (1, 128)
        "b2": jnp.asarray(params["b2"])[None, :],   # (1, latent_dim)
        "b3": jnp.asarray(params["b3"])[None, :],   # (1, 128)
        "b4": jnp.asarray(params["b4"])[None, :],   # (1, input_dim)
    }


@jax.jit
def autoencoder_forward(x, prepared):
    """x: [batch, input_dim] float32.  prepared: output of prepare_params()."""
    batch, input_dim = x.shape
    latent_dim = prepared["w2"].shape[1]

    tile_b = _choose_tile_b(batch, input_dim, latent_dim)
    batch_p = _round_up(batch, tile_b)
    if batch_p != batch:
        x = jnp.pad(x, ((0, batch_p - batch), (0, 0)))
    num_tiles = pl.cdiv(batch_p, tile_b)

    # VMEM budget: resident weights + double-buffered activation tiles + headroom,
    # clamped well inside v7x's 64 MiB physical VMEM per TensorCore.
    wb = _weight_bytes(input_dim, latent_dim)
    vmem_limit = int(min(max(2 * (wb + _footprint_bytes(tile_b, input_dim, latent_dim)),
                             32 * 1024 * 1024),
                         56 * 1024 * 1024))

    # 4 matmuls: 2*B*(in*128 + 128*lat + lat*128 + 128*in)
    flops = 4 * batch_p * HIDDEN * (input_dim + latent_dim)
    bytes_accessed = 4 * (batch_p * (2 * input_dim + latent_dim) + wb // 4)

    const = lambda i: (0, 0)   # weights/biases: same block every step -> VMEM-resident
    tiled = lambda i: (i, 0)   # x / enc / dec: one batch tile per grid step

    enc, dec = pl.pallas_call(
        _autoencoder_kernel,
        out_shape=(
            jax.ShapeDtypeStruct((batch_p, latent_dim), x.dtype),
            jax.ShapeDtypeStruct((batch_p, input_dim), x.dtype),
        ),
        grid=(num_tiles,),
        in_specs=[
            pl.BlockSpec((tile_b, input_dim), tiled),       # x
            pl.BlockSpec((input_dim, HIDDEN), const),       # w1
            pl.BlockSpec((1, HIDDEN), const),               # b1
            pl.BlockSpec((HIDDEN, latent_dim), const),      # w2
            pl.BlockSpec((1, latent_dim), const),           # b2
            pl.BlockSpec((latent_dim, HIDDEN), const),      # w3
            pl.BlockSpec((1, HIDDEN), const),               # b3
            pl.BlockSpec((HIDDEN, input_dim), const),       # w4
            pl.BlockSpec((1, input_dim), const),            # b4
        ],
        out_specs=(
            pl.BlockSpec((tile_b, latent_dim), tiled),      # enc
            pl.BlockSpec((tile_b, input_dim), tiled),       # dec
        ),
        compiler_params=pltpu.CompilerParams(
            dimension_semantics=("parallel",),
            vmem_limit_bytes=vmem_limit,
        ),
        cost_estimate=pl.CostEstimate(
            flops=flops, transcendentals=0, bytes_accessed=bytes_accessed),
    )(x,
      prepared["w1"], prepared["b1"],
      prepared["w2"], prepared["b2"],
      prepared["w3"], prepared["b3"],
      prepared["w4"], prepared["b4"])

    if batch_p != batch:
        enc = enc[:batch]
        dec = dec[:batch]
    return enc, dec


def init_params(key, input_dim, latent_dim, hidden=HIDDEN):
    """Deterministic init mimicking PyTorch nn.Linear defaults
    (uniform in [-1/sqrt(fan_in), 1/sqrt(fan_in)]), stored PyTorch-style (out, in)."""
    keys = jax.random.split(key, 8)

    def linear(kw, kb, fan_in, fan_out):
        bound = 1.0 / jnp.sqrt(fan_in)
        w = jax.random.uniform(kw, (fan_out, fan_in), jnp.float32, -bound, bound)
        b = jax.random.uniform(kb, (fan_out,), jnp.float32, -bound, bound)
        return w, b

    w1, b1 = linear(keys[0], keys[1], input_dim, hidden)
    w2, b2 = linear(keys[2], keys[3], hidden, latent_dim)
    w3, b3 = linear(keys[4], keys[5], latent_dim, hidden)
    w4, b4 = linear(keys[6], keys[7], hidden, input_dim)
    return {"w1": w1, "b1": b1, "w2": w2, "b2": b2,
            "w3": w3, "b3": b3, "w4": w4, "b4": b4}


def _reference_forward(x, params):
    """Pure-JAX reference replicating PyTorch semantics exactly."""
    h1 = jnp.maximum(x @ params["w1"].T + params["b1"], 0.0)
    enc = h1 @ params["w2"].T + params["b2"]
    h2 = jnp.maximum(enc @ params["w3"].T + params["b3"], 0.0)
    dec = h2 @ params["w4"].T + params["b4"]
    return enc, dec


if __name__ == "__main__":
    key = jax.random.PRNGKey(0)
    k_param, k_x = jax.random.split(key)

    batch, input_dim, latent_dim = 8, 32, 8
    params = init_params(k_param, input_dim, latent_dim)
    prepared = prepare_params(params)   # one-time weight transposes (outside jit path)
    x = jax.random.normal(k_x, (batch, input_dim), dtype=jnp.float32)

    enc, dec = autoencoder_forward(x, prepared)
    jax.block_until_ready((enc, dec))

    enc_ref, dec_ref = _reference_forward(x, params)
    assert enc.shape == (batch, latent_dim) and dec.shape == (batch, input_dim)
    assert jnp.allclose(enc, enc_ref, atol=1e-5, rtol=1e-5)
    assert jnp.allclose(dec, dec_ref, atol=1e-5, rtol=1e-5)

    print("KERNEL_OK")
</pallas_src>

<mosaic_0001>
module attributes {stable_mosaic.version = 11 : i64} {
  func.func @_autoencoder_kernel(%arg0: i32, %arg1: memref<8x32xf32, #tpu.memory_space<vmem>>, %arg2: memref<32x128xf32, #tpu.memory_space<vmem>>, %arg3: memref<1x128xf32, #tpu.memory_space<vmem>>, %arg4: memref<128x8xf32, #tpu.memory_space<vmem>>, %arg5: memref<1x8xf32, #tpu.memory_space<vmem>>, %arg6: memref<8x128xf32, #tpu.memory_space<vmem>>, %arg7: memref<1x128xf32, #tpu.memory_space<vmem>>, %arg8: memref<128x32xf32, #tpu.memory_space<vmem>>, %arg9: memref<1x32xf32, #tpu.memory_space<vmem>>, %arg10: memref<8x8xf32, #tpu.memory_space<vmem>>, %arg11: memref<8x32xf32, #tpu.memory_space<vmem>>) attributes {dimension_semantics = [#tpu.dimension_semantics<parallel>], iteration_bounds = array<i64: 1>, scalar_prefetch = 0 : i64, scratch_operands = 0 : i64, tpu.core_type = #tpu.core_type<tc>, window_params = [{transform_indices = @transform_0, window_bounds = array<i64: 8, 32>}, {pipeline_mode = #tpu.pipeline_mode<synchronous>, transform_indices = @transform_1, window_bounds = array<i64: 32, 128>}, {pipeline_mode = #tpu.pipeline_mode<synchronous>, transform_indices = @transform_2, window_bounds = array<i64: 1, 128>}, {pipeline_mode = #tpu.pipeline_mode<synchronous>, transform_indices = @transform_3, window_bounds = array<i64: 128, 8>}, {pipeline_mode = #tpu.pipeline_mode<synchronous>, transform_indices = @transform_4, window_bounds = array<i64: 1, 8>}, {pipeline_mode = #tpu.pipeline_mode<synchronous>, transform_indices = @transform_5, window_bounds = array<i64: 8, 128>}, {pipeline_mode = #tpu.pipeline_mode<synchronous>, transform_indices = @transform_6, window_bounds = array<i64: 1, 128>}, {pipeline_mode = #tpu.pipeline_mode<synchronous>, transform_indices = @transform_7, window_bounds = array<i64: 128, 32>}, {pipeline_mode = #tpu.pipeline_mode<synchronous>, transform_indices = @transform_8, window_bounds = array<i64: 1, 32>}, {transform_indices = @transform_9, window_bounds = array<i64: 8, 8>}, {transform_indices = @transform_10, window_bounds = array<i64: 8, 32>}]} {
    %c0 = arith.constant 0 : index
    %c0_0 = arith.constant 0 : index
    %0 = vector.load %arg1[%c0, %c0_0] : memref<8x32xf32, #tpu.memory_space<vmem>>, vector<8x32xf32>
    %c0_1 = arith.constant 0 : index
    %c0_2 = arith.constant 0 : index
    %1 = vector.load %arg2[%c0_1, %c0_2] : memref<32x128xf32, #tpu.memory_space<vmem>>, vector<32x128xf32>
    %cst = arith.constant dense<0.000000e+00> : vector<8x128xf32>
    %2 = tpu.matmul %0, %1, %cst {dimension_numbers = #tpu.dot_dimension_numbers<[1], [0], [0], [1], [0, 0, 1, 1], [], []>} : vector<8x32xf32>, vector<32x128xf32>, vector<8x128xf32> -> vector<8x128xf32>
    %c0_3 = arith.constant 0 : index
    %c0_4 = arith.constant 0 : index
    %3 = vector.load %arg3[%c0_3, %c0_4] : memref<1x128xf32, #tpu.memory_space<vmem>>, vector<1x128xf32>
    %4 = vector.broadcast %3 : vector<1x128xf32> to vector<8x128xf32>
    %5 = arith.addf %2, %4 : vector<8x128xf32>
    %cst_5 = arith.constant 0.000000e+00 : f32
    %6 = vector.broadcast %cst_5 : f32 to vector<8x128xf32>
    %7 = arith.maximumf %5, %6 : vector<8x128xf32>
    %c0_6 = arith.constant 0 : index
    %c0_7 = arith.constant 0 : index
    %8 = vector.load %arg4[%c0_6, %c0_7] : memref<128x8xf32, #tpu.memory_space<vmem>>, vector<128x8xf32>
    %cst_8 = arith.constant dense<0.000000e+00> : vector<8x8xf32>
    %9 = tpu.matmul %7, %8, %cst_8 {dimension_numbers = #tpu.dot_dimension_numbers<[1], [0], [0], [1], [0, 0, 1, 1], [], []>} : vector<8x128xf32>, vector<128x8xf32>, vector<8x8xf32> -> vector<8x8xf32>
    %c0_9 = arith.constant 0 : index
    %c0_10 = arith.constant 0 : index
    %10 = vector.load %arg5[%c0_9, %c0_10] : memref<1x8xf32, #tpu.memory_space<vmem>>, vector<1x8xf32>
    %11 = vector.broadcast %10 : vector<1x8xf32> to vector<8x8xf32>
    %12 = arith.addf %9, %11 : vector<8x8xf32>
    %c0_11 = arith.constant 0 : index
    %c0_12 = arith.constant 0 : index
    %13 = vector.load %arg10[%c0_11, %c0_12] : memref<8x8xf32, #tpu.memory_space<vmem>>, vector<8x8xf32>
    tpu.vector_store %arg10[%c0_11, %c0_12], %12 {strides = array<i32>} : memref<8x8xf32, #tpu.memory_space<vmem>>, vector<8x8xf32>,
    %c0_13 = arith.constant 0 : index
    %c0_14 = arith.constant 0 : index
    %14 = vector.load %arg6[%c0_13, %c0_14] : memref<8x128xf32, #tpu.memory_space<vmem>>, vector<8x128xf32>
    %cst_15 = arith.constant dense<0.000000e+00> : vector<8x128xf32>
    %15 = tpu.matmul %12, %14, %cst_15 {dimension_numbers = #tpu.dot_dimension_numbers<[1], [0], [0], [1], [0, 0, 1, 1], [], []>} : vector<8x8xf32>, vector<8x128xf32>, vector<8x128xf32> -> vector<8x128xf32>
    %c0_16 = arith.constant 0 : index
    %c0_17 = arith.constant 0 : index
    %16 = vector.load %arg7[%c0_16, %c0_17] : memref<1x128xf32, #tpu.memory_space<vmem>>, vector<1x128xf32>
    %17 = vector.broadcast %16 : vector<1x128xf32> to vector<8x128xf32>
    %18 = arith.addf %15, %17 : vector<8x128xf32>
    %cst_18 = arith.constant 0.000000e+00 : f32
    %19 = vector.broadcast %cst_18 : f32 to vector<8x128xf32>
    %20 = arith.maximumf %18, %19 : vector<8x128xf32>
    %c0_19 = arith.constant 0 : index
    %c0_20 = arith.constant 0 : index
    %21 = vector.load %arg8[%c0_19, %c0_20] : memref<128x32xf32, #tpu.memory_space<vmem>>, vector<128x32xf32>
    %cst_21 = arith.constant dense<0.000000e+00> : vector<8x32xf32>
    %22 = tpu.matmul %20, %21, %cst_21 {dimension_numbers = #tpu.dot_dimension_numbers<[1], [0], [0], [1], [0, 0, 1, 1], [], []>} : vector<8x128xf32>, vector<128x32xf32>, vector<8x32xf32> -> vector<8x32xf32>
    %c0_22 = arith.constant 0 : index
    %c0_23 = arith.constant 0 : index
    %23 = vector.load %arg9[%c0_22, %c0_23] : memref<1x32xf32, #tpu.memory_space<vmem>>, vector<1x32xf32>
    %24 = vector.broadcast %23 : vector<1x32xf32> to vector<8x32xf32>
    %25 = arith.addf %22, %24 : vector<8x32xf32>
    %c0_24 = arith.constant 0 : index
    %c0_25 = arith.constant 0 : index
    %26 = vector.load %arg11[%c0_24, %c0_25] : memref<8x32xf32, #tpu.memory_space<vmem>>, vector<8x32xf32>
    tpu.vector_store %arg11[%c0_24, %c0_25], %25 {strides = array<i32>} : memref<8x32xf32, #tpu.memory_space<vmem>>, vector<8x32xf32>,
    return
  }
  func.func @transform_0(%arg0: i32) -> (i32, i32) {
    %c0_i32 = arith.constant 0 : i32
    %c0_i32_0 = arith.constant 0 : i32
    return %arg0, %c0_i32 : i32, i32
  }
  func.func @transform_1(%arg0: i32) -> (i32, i32) {
    %c0_i32 = arith.constant 0 : i32
    %c0_i32_0 = arith.constant 0 : i32
    %c0_i32_1 = arith.constant 0 : i32
    return %c0_i32, %c0_i32_0 : i32, i32
  }
  func.func @transform_2(%arg0: i32) -> (i32, i32) {
    %c0_i32 = arith.constant 0 : i32
    %c0_i32_0 = arith.constant 0 : i32
    %c0_i32_1 = arith.constant 0 : i32
    return %c0_i32, %c0_i32_0 : i32, i32
  }
  func.func @transform_3(%arg0: i32) -> (i32, i32) {
    %c0_i32 = arith.constant 0 : i32
    %c0_i32_0 = arith.constant 0 : i32
    %c0_i32_1 = arith.constant 0 : i32
    return %c0_i32, %c0_i32_0 : i32, i32
  }
  func.func @transform_4(%arg0: i32) -> (i32, i32) {
    %c0_i32 = arith.constant 0 : i32
    %c0_i32_0 = arith.constant 0 : i32
    %c0_i32_1 = arith.constant 0 : i32
    return %c0_i32, %c0_i32_0 : i32, i32
  }
  func.func @transform_5(%arg0: i32) -> (i32, i32) {
    %c0_i32 = arith.constant 0 : i32
    %c0_i32_0 = arith.constant 0 : i32
    %c0_i32_1 = arith.constant 0 : i32
    return %c0_i32, %c0_i32_0 : i32, i32
  }
  func.func @transform_6(%arg0: i32) -> (i32, i32) {
    %c0_i32 = arith.constant 0 : i32
    %c0_i32_0 = arith.constant 0 : i32
    %c0_i32_1 = arith.constant 0 : i32
    return %c0_i32, %c0_i32_0 : i32, i32
  }
  func.func @transform_7(%arg0: i32) -> (i32, i32) {
    %c0_i32 = arith.constant 0 : i32
    %c0_i32_0 = arith.constant 0 : i32
    %c0_i32_1 = arith.constant 0 : i32
    return %c0_i32, %c0_i32_0 : i32, i32
  }
  func.func @transform_8(%arg0: i32) -> (i32, i32) {
    %c0_i32 = arith.constant 0 : i32
    %c0_i32_0 = arith.constant 0 : i32
    %c0_i32_1 = arith.constant 0 : i32
    return %c0_i32, %c0_i32_0 : i32, i32
  }
  func.func @transform_9(%arg0: i32) -> (i32, i32) {
    %c0_i32 = arith.constant 0 : i32
    %c0_i32_0 = arith.constant 0 : i32
    return %arg0, %c0_i32 : i32, i32
  }
  func.func @transform_10(%arg0: i32) -> (i32, i32) {
    %c0_i32 = arith.constant 0 : i32
    %c0_i32_0 = arith.constant 0 : i32
    return %arg0, %c0_i32 : i32, i32
  }
}

</mosaic_0001>

<bundles_post_ra>
// kernel: autoencoder_forward.1
= control target key start
LH: loop header
LB: loop body
LE: loop exit
PB: predicated region body
PF: predicated region fallthrough
CT: control target
= control target key end

     0   :  { %16 = vsyncpa [#allocation3], 0  ;;  %v603_v1 = vmov 0.0   ;;  %vm604_vm0 = vmmov 0   ;;  %vm48_vm1 = vcmask 261120   ;;  %s841_s0 = inlined_call_operand.vmem [shape: f32[8,32], index: 0, kind: input, shape index: {}]   ;;  %s842_s1 = inlined_call_operand.vmem [shape: f32[32,128], index: 1, kind: input, shape index: {}]   ;;  %s843_s2 = inlined_call_operand.vmem [shape: f32[1,128], index: 2, kind: input, shape index: {}]   ;;  %s844_s3 = inlined_call_operand.vmem [shape: f32[128,8], index: 3, kind: input, shape index: {}]   ;;  %s845_s4 = inlined_call_operand.vmem [shape: f32[1,8], index: 4, kind: input, shape index: {}]   ;;  %s846_s5 = inlined_call_operand.vmem [shape: f32[8,128], index: 5, kind: input, shape index: {}]   ;;  %s847_s6 = inlined_call_operand.vmem [shape: f32[1,128], index: 6, kind: input, shape index: {}]   ;;  %s848_s7 = inlined_call_operand.vmem [shape: f32[128,32], index: 7, kind: input, shape index: {}]   ;;  %s849_s8 = inlined_call_operand.vmem [shape: f32[1,32], index: 8, kind: input, shape index: {}]   ;;  %s850_s9 = inlined_call_operand.hbm [shape: f32[8,8], index: 9, kind: output, shape index: {0}]   ;;  %s851_s10 = inlined_call_operand.hbm [shape: f32[8,32], index: 10, kind: output, shape index: {1}]  }
   0x1   :  { %v40_v0 = vld [vmem:[%s842_s1 + $0x18] sm:$0xff]  ;;  %469 = vmatprep.subr.mxu1 %v603_v1  ;;  %v39_v2 = vld [vmem:[%s842_s1 + $0x10] sm:$0xff]  ;;  %477 = vmatprep.mubr.msk.f32.mxu1 %vm604_vm0, %v603_v1  ;;  %v38_v3 = vld [vmem:[%s842_s1 + $0x8] sm:$0xff] }
   0x2   :  { %470 = vmatpush3.msra.mxu1 %v40_v0  ;;  %515 = vmatprep.subr.mxu0 %v603_v1  ;;  %v37_v4 = vld [vmem:[%s842_s1] sm:$0xff] }
   0x3   :  { %471 = vmatprep.subr.mxu1 %v603_v1  ;;  %517 = vmatprep.mubr.msk.f32.mxu0 %vm604_vm0, %v603_v1  ;;  %v36_v5 = vld [vmem:[%s841_s0] sm:$0xff] }
   0x4   :  { %472 = vmatpush3.msra.mxu1 %v39_v2 }
   0x5   :  { %473 = vmatprep.subr.mxu1 %v603_v1 }
   0x6   :  { %474 = vmatpush3.msra.mxu1 %v38_v3 }
   0x7   :  { %17 = vsyncpa [#allocation5], 0  ;;  %475 = vmatprep.subr.mxu1 %v603_v1  ;;  %v138_v6 = vld [vmem:[%s844_s3 + $0x78] sm:$0xff]  ;;  %v137_v7 = vld [vmem:[%s844_s3 + $0x70] sm:$0xff]  ;;  %vm216_vm2 = vcmask 64512   ;;  %s605_s21 = smov [#allocation2]  }
   0x8   :  { %476 = vmatpush3.msra.mxu1 %v37_v4  ;;  %v136_v8 = vld [vmem:[%s844_s3 + $0x68] sm:$0xff]  ;;  %v135_v9 = vld [vmem:[%s844_s3 + $0x60] sm:$0xff]  ;;  %v134_v10 = vld [vmem:[%s844_s3 + $0x58] sm:$0xff]  ;;  %s400_s22 = sshll.u32 %s605_s21, 4  ;;  %s401_s22 = int_to_ptr.vmem [resolvable:$true] %s400_s22 }
   0x9   :  { %478 = vmatmul.mubr.msk.f32.vlgmr.msra.gmra.mxu1 %vm48_vm1, %v36_v5  ;;  %480 = vmatprep.subr.mxu1 %v603_v1  ;;  %v133_v11 = vld [vmem:[%s844_s3 + $0x50] sm:$0xff]  ;;  %v132_v12 = vld [vmem:[%s844_s3 + $0x48] sm:$0xff]  ;;  %v131_v13 = vld [vmem:[%s844_s3 + $0x40] sm:$0xff]  ;;  %s559_s23 = scalar_lea.vmem %s401_s22, 128  ;;  %p564_p1 = scmp.lt.s32.totalorder %s401_s22, %s401_s22 }
   0xa   :  { %481 = vmatpush3.msra.mxu1 %v138_v6  ;;  %512 = vmatprep.mubr.msk.f32.mxu1 %vm604_vm0, %v603_v1  ;;  %v130_v14 = vld [vmem:[%s844_s3 + $0x38] sm:$0xff]  ;;  %v129_v15 = vld [vmem:[%s844_s3 + $0x30] sm:$0xff]  ;;  %v128_v16 = vld [vmem:[%s844_s3 + $0x28] sm:$0xff]  ;;  %p560_p0 = scmp.ne.s32.totalorder %s401_s22, %s559_s23  ;;  %p565_p2 = scmp.lt.s32.totalorder %s559_s23, %s559_s23 }
   0xb   :  { %482 = vmatprep.subr.mxu1 %v603_v1  ;;  %v127_v17 = vld [vmem:[%s844_s3 + $0x20] sm:$0xff]  ;;  %v126_v18 = vld [vmem:[%s844_s3 + $0x18] sm:$0xff]  ;;  %v125_v19 = vld [vmem:[%s844_s3 + $0x10] sm:$0xff] }
   0xc   :  { %483 = vmatpush3.msra.mxu1 %v137_v7  ;;  %v124_v20 = vld [vmem:[%s844_s3 + $0x8] sm:$0xff]  ;;  %v123_v21 = vld [vmem:[%s844_s3] sm:$0xff]  ;;  %v315_v31 = vld [vmem:[%s848_s7 + $0x78] sm:$0xff]  ;;  %p566_p3 = por %p565_p2, %p564_p1 }
   0xd   :  { %484 = vmatprep.subr.mxu1 %v603_v1  ;;  %v422_v22 = vld [vmem:[%s843_s2] ss:$0 sm:$0xff]  ;;  %v314_v33 = vld [vmem:[%s848_s7 + $0x70] sm:$0xff]  ;;  %v313_v34 = vld [vmem:[%s848_s7 + $0x68] sm:$0xff] }
   0xe   :  { %485 = vmatpush3.msra.mxu1 %v136_v8  ;;  %v218_v27 = vld [vmem:[%s846_s5] sm:$0xff]  ;;  %v311_v36 = vld [vmem:[%s848_s7 + $0x58] sm:$0xff]  ;;  %v310_v37 = vld [vmem:[%s848_s7 + $0x50] sm:$0xff]  ;;  %p567_p4 = pnand %p566_p3, %p560_p0 }
   0xf   :  { %486 = vmatprep.subr.mxu1 %v603_v1  ;;  %516 = vmatpush3.msra.mxu0 %v218_v27  ;;  %v424_v28 = vld [vmem:[%s845_s4] ss:$0 sm:$0xff]  ;;  %v309_v38 = vld [vmem:[%s848_s7 + $0x48] sm:$0xff]  ;;  %v307_v40 = vld [vmem:[%s848_s7 + $0x38] sm:$0xff] }
  0x10   :  { %487 = vmatpush3.msra.mxu1 %v135_v9  ;;  %520 = vmatprep.subr.mxu0 %v603_v1  ;;  %v312_v35 = vld [vmem:[%s848_s7 + $0x60] sm:$0xff]  ;;  %v306_v41 = vld [vmem:[%s848_s7 + $0x30] sm:$0xff]  ;;  %v305_v42 = vld [vmem:[%s848_s7 + $0x28] sm:$0xff] }
  0x11   :  { %488 = vmatprep.subr.mxu1 %v603_v1  ;;  %v308_v39 = vld [vmem:[%s848_s7 + $0x40] sm:$0xff]  ;;  %v303_v44 = vld [vmem:[%s848_s7 + $0x18] sm:$0xff]  ;;  %v302_v45 = vld [vmem:[%s848_s7 + $0x10] sm:$0xff] }
  0x12   :  { %489 = vmatpush3.msra.mxu1 %v134_v10  ;;  %v304_v43 = vld [vmem:[%s848_s7 + $0x20] sm:$0xff]  ;;  %v301_v46 = vld [vmem:[%s848_s7 + $0x8] sm:$0xff] }
  0x13   :  { %490 = vmatprep.subr.mxu1 %v603_v1  ;;  %v300_v47 = vld [vmem:[%s848_s7] sm:$0xff] }
  0x14   :  { %491 = vmatpush3.msra.mxu1 %v133_v11  ;;  %v425_v48 = vld [vmem:[%s847_s6] ss:$0 sm:$0xff] }
  0x15   :  { %492 = vmatprep.subr.mxu1 %v603_v1 }
  0x16   :  { %493 = vmatpush3.msra.mxu1 %v132_v12 }
  0x17   :  { %494 = vmatprep.subr.mxu1 %v603_v1 }
  0x18   :  { %495 = vmatpush3.msra.mxu1 %v131_v13 }
  0x19   :  { %496 = vmatprep.subr.mxu1 %v603_v1 }
  0x1a   :  { %497 = vmatpush3.msra.mxu1 %v130_v14 }
  0x1b   :  { %498 = vmatprep.subr.mxu1 %v603_v1 }
  0x1c   :  { %499 = vmatpush3.msra.mxu1 %v129_v15 }
  0x1d   :  { %500 = vmatprep.subr.mxu1 %v603_v1 }
  0x1e   :  { %501 = vmatpush3.msra.mxu1 %v128_v16 }
  0x1f   :  { %502 = vmatprep.subr.mxu1 %v603_v1 }
  0x20   :  { %503 = vmatpush3.msra.mxu1 %v127_v17 }
  0x21   :  { %504 = vmatprep.subr.mxu1 %v603_v1 }
  0x22   :  { %505 = vmatpush3.msra.mxu1 %v126_v18 }
  0x23   :  { %506 = vmatprep.subr.mxu1 %v603_v1 }
  0x24   :  { %507 = vmatpush3.msra.mxu1 %v125_v19 }
  0x25   :  { %508 = vmatprep.subr.mxu1 %v603_v1 }
  0x26   :  { %509 = vmatpush3.msra.mxu1 %v124_v20 }
  0x27   :  { %510 = vmatprep.subr.mxu1 %v603_v1 }
  0x28   :  { %511 = vmatpush3.msra.mxu1 %v123_v21 }
  0xc9   :  { %v118_v23 = vpop.f32.mrf.mxu1 }
  0xca   :  { %v119_v24 = vadd.f32 %v422_v22, %v118_v23 }
  0xcb   :  { %v479_v25 = vpop.f32.mrf.mxu1 }
  0xcc   :  { %v122_v26 = vmax.f32 %v119_v24, 0.0 }
  0xce   :  { %513 = vmatmul.mubr.f32.vlgmr.msra.gmra.mxu1 %v122_v26 }
 0x18e   :  { %v212_v29 = vpop.f32.mrf.mxu1 }
 0x18f   :  { %v213_v30 = vadd.f32 %v424_v28, %v212_v29 }
 0x190   :  { %v514_v32 = vpop.f32.mrf.mxu1 }
 0x191   :  { %518 = vmatmul.mubr.msk.f32.vlgmr.msra.gmra.mxu0 %vm216_vm2, %v213_v30  ;;  %217 = vst.msk [vmem:[#allocation2] sm:$0xff] %vm216_vm2, %v213_v30 }
 0x192   :  { %521 = vmatpush3.msra.mxu0 %v315_v31  ;;  %552 = vmatprep.mubr.msk.f32.mxu0 %vm604_vm0, %v603_v1 }
 0x193   :  { %522 = vmatprep.subr.mxu0 %v603_v1 }
 0x194   :  { %523 = vmatpush3.msra.mxu0 %v314_v33 }
 0x195   :  { %524 = vmatprep.subr.mxu0 %v603_v1 }
 0x196   :  { %525 = vmatpush3.msra.mxu0 %v313_v34 }
 0x197   :  { %526 = vmatprep.subr.mxu0 %v603_v1 }
 0x198   :  { %527 = vmatpush3.msra.mxu0 %v312_v35 }
 0x199   :  { %528 = vmatprep.subr.mxu0 %v603_v1 }
 0x19a   :  { %529 = vmatpush3.msra.mxu0 %v311_v36 }
 0x19b   :  { %530 = vmatprep.subr.mxu0 %v603_v1 }
 0x19c   :  { %531 = vmatpush3.msra.mxu0 %v310_v37 }
 0x19d   :  { %532 = vmatprep.subr.mxu0 %v603_v1 }
 0x19e   :  { %533 = vmatpush3.msra.mxu0 %v309_v38 }
 0x19f   :  { %534 = vmatprep.subr.mxu0 %v603_v1 }
 0x1a0   :  { %535 = vmatpush3.msra.mxu0 %v308_v39 }
 0x1a1   :  { %536 = vmatprep.subr.mxu0 %v603_v1 }
 0x1a2   :  { %537 = vmatpush3.msra.mxu0 %v307_v40 }
 0x1a3   :  { %538 = vmatprep.subr.mxu0 %v603_v1 }
 0x1a4   :  { %539 = vmatpush3.msra.mxu0 %v306_v41 }
 0x1a5   :  { %540 = vmatprep.subr.mxu0 %v603_v1 }
 0x1a6   :  { %541 = vmatpush3.msra.mxu0 %v305_v42 }
 0x1a7   :  { %542 = vmatprep.subr.mxu0 %v603_v1 }
 0x1a8   :  { %543 = vmatpush3.msra.mxu0 %v304_v43 }
 0x1a9   :  { %544 = vmatprep.subr.mxu0 %v603_v1 }
 0x1aa   :  { %545 = vmatpush3.msra.mxu0 %v303_v44 }
 0x1ab   :  { %546 = vmatprep.subr.mxu0 %v603_v1 }
 0x1ac   :  { %547 = vmatpush3.msra.mxu0 %v302_v45 }
 0x1ad   :  { %548 = vmatprep.subr.mxu0 %v603_v1 }
 0x1ae   :  { %549 = vmatpush3.msra.mxu0 %v301_v46 }
 0x1af   :  { %550 = vmatprep.subr.mxu0 %v603_v1 }
 0x1b0   :  { %551 = vmatpush3.msra.mxu0 %v300_v47 }
 0x251   :  { %v295_v49 = vpop.f32.mrf.mxu0 }
 0x252   :  { %v296_v50 = vadd.f32 %v425_v48, %v295_v49 }
 0x253   :  { %v519_v51 = vpop.f32.mrf.mxu0 }
 0x254   :  { %v299_v52 = vmax.f32 %v296_v50, 0.0 }
 0x256   :  { %553 = vmatmul.mubr.f32.vlgmr.msra.gmra.mxu0 %v299_v52 }
 0x257   :  { %570 = shalt.err (!%p567_p4)
}
 0x258   :  { %403 = dma.vmem_to_hbm [thread:$0]  %s401_s22, 128, %s850_s9, [#allocation3]   ;;  %v427_v53 = vld [vmem:[%s849_s8] ss:$0 sm:$0xff] }
 0x259   :  { %s606_s1 = smov [#allocation4]  }
 0x25a   :  { %s410_s0 = sshll.u32 %s606_s1, 4  ;;  %s411_s0 = int_to_ptr.vmem [resolvable:$true] %s410_s0 }
 0x25b   :  { %s579_s26 = scalar_lea.vmem %s411_s0, 128  ;;  %p584_p6 = scmp.lt.s32.totalorder %s411_s0, %s411_s0 }
 0x25c   :  { %p580_p5 = scmp.ne.s32.totalorder %s411_s0, %s579_s26  ;;  %p585_p7 = scmp.lt.s32.totalorder %s579_s26, %s579_s26 }
 0x25e   :  { %p586_p8 = por %p585_p7, %p584_p6 }
 0x260   :  { %p587_p9 = pnand %p586_p8, %p580_p5 }
 0x316   :  { %v389_v54 = vpop.f32.mrf.mxu0 }
 0x317   :  { %v390_v55 = vadd.f32 %v427_v53, %v389_v54 }
 0x318   :  { %v554_v56 = vpop.f32.mrf.mxu0 }
 0x319   :  { %393 = vst.msk [vmem:[#allocation4] sm:$0xff] %vm48_vm1, %v390_v55 }
 0x31a   :  { %590 = shalt.err (!%p587_p9)
}
 0x31b   :  { %413 = dma.vmem_to_hbm [thread:$0]  %s411_s0, 128, %s851_s10, [#allocation5]  }
 0x31c   :  { %599 = dma.done.wait [#allocation3], 128  }
 0x31d   :  { %600 = vsyncadd [#allocation3], 4294967168 }
 0x31e   :  { %601 = dma.done.wait [#allocation5], 128  }
 0x31f   :  { %602 = vsyncadd [#allocation5], 4294967168 }
 0x320   :  { %420 = vsyncpa [#allocation3], 1 }
 0x321   :  { %421 = vsyncpa [#allocation5], 1 }

</bundles_post_ra>
